<compile_context>
chip_gen: v6e
topology: v6e:2x2x1
jax: 0.10.0
libtpu: 0.0.40
codegen_flags: <defaults>
</compile_context>

<pallas_src>
import math
import functools

import jax
import jax.numpy as jnp
from jax.experimental import pallas as pl
from jax.experimental.pallas import tpu as pltpu

NEG_SLOPE = 0.01   # torch.nn.LeakyReLU default
LN_EPS = 1e-5      # torch.nn.LayerNorm default


def _lsa_kernel(x_ref, wqkv_ref, bqkv_ref, gamma_ref, beta_ref, out_ref, *,
                hidden_size, hidden_pad, window_size, windows_per_block, top_k):
    Hp = hidden_pad
    W = window_size
    nwin = windows_per_block
    B = x_ref.shape[0]
    groups = B * nwin                # independent attention blocks in this tile
    rows = groups * W

    x = x_ref[...]                                   # (B, nwin*W, Hp) f32
    x2d = x.reshape(rows, Hp)
    x_bf = x2d.astype(jnp.bfloat16)

    # Fused QKV projection: one bf16 MXU matmul with f32 accumulation.
    qkv = jnp.dot(x_bf, wqkv_ref[...],
                  preferred_element_type=jnp.float32) + bqkv_ref[...]   # (rows, 3Hp)

    q = qkv[:, 0 * Hp:1 * Hp].astype(jnp.bfloat16).reshape(groups, W, Hp)
    k = qkv[:, 1 * Hp:2 * Hp].astype(jnp.bfloat16).reshape(groups, W, Hp)
    v = qkv[:, 2 * Hp:3 * Hp].astype(jnp.bfloat16).reshape(groups, W, Hp)

    # Per-window scores; scale applied once in f32 (order-preserving for topk).
    scale = jnp.float32(1.0 / math.sqrt(hidden_size))
    scores = jnp.einsum('gqh,gkh->gqk', q, k,
                        preferred_element_type=jnp.float32) * scale     # f32

    # k-th largest per row via iterative selection (static small top_k ->
    # fully unrolled).  Entries below the threshold are masked to -inf,
    # matching torch.topk + masked_fill for tie-free inputs.
    neg_inf = jnp.float32(-jnp.inf)
    thr = jnp.full(scores.shape[:-1] + (1,), jnp.inf, dtype=jnp.float32)
    for _ in range(top_k):
        thr = jnp.max(jnp.where(scores < thr, scores, neg_inf),
                      axis=-1, keepdims=True)

    masked = jnp.where(scores >= thr, scores, neg_inf)
    masked = masked - jnp.max(masked, axis=-1, keepdims=True)
    e = jnp.exp(masked)
    denom = jnp.sum(e, axis=-1, keepdims=True)
    attn_w = (e * pl.reciprocal(denom, approx=True)).astype(jnp.bfloat16)

    attn_out = jnp.einsum('gqk,gkh->gqh', attn_w, v,
                          preferred_element_type=jnp.float32)
    attn_out = attn_out.reshape(B, nwin * W, Hp)

    # LeakyReLU, residual, LayerNorm over the REAL hidden size (padded lanes
    # of x / attn_out are exactly zero by construction).
    act = jnp.where(attn_out >= 0, attn_out, NEG_SLOPE * attn_out)
    z = act + x
    inv_h = jnp.float32(1.0 / hidden_size)
    mean = jnp.sum(z, axis=-1, keepdims=True) * inv_h
    if hidden_pad == hidden_size:
        centered = z - mean
    else:
        lane = jax.lax.broadcasted_iota(jnp.int32, (1, 1, Hp), 2)
        mask = (lane < hidden_size).astype(jnp.float32)
        centered = (z - mean) * mask
    var = jnp.sum(centered * centered, axis=-1, keepdims=True) * inv_h
    normed = centered * jax.lax.rsqrt(var + LN_EPS)
    out_ref[...] = normed * gamma_ref[...] + beta_ref[...]


def _pick_windows_per_block(num_windows, window_size, target_rows=512):
    """Largest divisor of num_windows with <= target_rows rows per tile,
    keeping at least 2 grid steps when possible (v7x: 2 TensorCores/chip)."""
    best = 1
    for d in range(1, num_windows + 1):
        if num_windows % d:
            continue
        if d * window_size > target_rows:
            continue
        if num_windows >= 2 and num_windows // d < 2:
            continue
        best = d
    return best


def local_sparse_attention(x, params, window_size, sparsity_threshold,
                           windows_per_block=None):
    B, S, H = x.shape
    assert S % window_size == 0, "sequence length must be a multiple of window_size"
    num_windows = S // window_size
    top_k = max(1, int(window_size * sparsity_threshold))
    wq, bq, wk, bk, wv, bv, gamma, beta = params

    # Lane-dense hidden dim.
    Hp = ((H + 127) // 128) * 128

    if windows_per_block is None:
        windows_per_block = _pick_windows_per_block(num_windows, window_size)
    assert num_windows % windows_per_block == 0
    num_blocks = num_windows // windows_per_block
    rows_per_block = windows_per_block * window_size

    def pad_w(w):   # (H, H) -> (Hp, Hp)
        return jnp.pad(w, ((0, Hp - H), (0, Hp - H)))

    def pad_r(r):   # (1, H) -> (1, Hp)
        return jnp.pad(r, ((0, 0), (0, Hp - H)))

    # Fused, padded, bf16 QKV weight; biases / LN params stay f32.
    wqkv = jnp.concatenate([pad_w(wq), pad_w(wk), pad_w(wv)],
                           axis=1).astype(jnp.bfloat16)            # (Hp, 3Hp)
    bqkv = jnp.concatenate([pad_r(bq), pad_r(bk), pad_r(bv)], axis=1)  # (1, 3Hp)
    gamma_p = pad_r(gamma)
    beta_p = pad_r(beta)
    x_p = jnp.pad(x, ((0, 0), (0, 0), (0, Hp - H)))                # (B, S, Hp) f32

    kernel = functools.partial(
        _lsa_kernel,
        hidden_size=H, hidden_pad=Hp, window_size=window_size,
        windows_per_block=windows_per_block, top_k=top_k)

    x_spec = pl.BlockSpec((B, rows_per_block, Hp), lambda i: (0, i, 0))
    # Grid-invariant residents (index_map constant -> no re-fetch per step).
    w_spec = pl.BlockSpec((Hp, 3 * Hp), lambda i: (0, 0))
    b_spec = pl.BlockSpec((1, 3 * Hp), lambda i: (0, 0))
    g_spec = pl.BlockSpec((1, Hp), lambda i: (0, 0))

    out_p = pl.pallas_call(
        kernel,
        out_shape=jax.ShapeDtypeStruct((B, S, Hp), jnp.float32),
        grid=(num_blocks,),
        in_specs=[x_spec, w_spec, b_spec, g_spec, g_spec],
        out_specs=x_spec,
        compiler_params=pltpu.CompilerParams(
            dimension_semantics=("parallel",),
            vmem_limit_bytes=64 * 1024 * 1024),
    )(x_p, wqkv, bqkv, gamma_p, beta_p)

    return out_p[:, :, :H]


def _reference(x, params, window_size, sparsity_threshold):
    """Pure-JAX reference mirroring the PyTorch forward, with the same bf16
    matmul inputs / f32 accumulation as the kernel (for verification)."""
    wq, bq, wk, bk, wv, bv, gamma, beta = params
    B, S, H = x.shape
    W = window_size
    num_windows = S // W
    top_k = max(1, int(W * sparsity_threshold))
    scale = 1.0 / math.sqrt(H)
    xb = x.astype(jnp.bfloat16)

    def proj(w, b):
        return jnp.einsum('bsh,hd->bsd', xb, w.astype(jnp.bfloat16),
                          preferred_element_type=jnp.float32) + b[0]

    q = proj(wq, bq)
    k = proj(wk, bk)
    v = proj(wv, bv)

    outs = []
    for i in range(num_windows):
        sl = slice(i * W, (i + 1) * W)
        qs = q[:, sl].astype(jnp.bfloat16)
        ks = k[:, sl].astype(jnp.bfloat16)
        vs = v[:, sl].astype(jnp.bfloat16)
        scores = jnp.einsum('bqh,bkh->bqk', qs, ks,
                            preferred_element_type=jnp.float32) * scale
        topv, _ = jax.lax.top_k(scores, top_k)
        thr = topv[..., -1:]
        masked = jnp.where(scores >= thr, scores, -jnp.inf)
        masked = masked - jnp.max(masked, axis=-1, keepdims=True)
        wts = jax.nn.softmax(masked, axis=-1).astype(jnp.bfloat16)
        outs.append(jnp.einsum('bqk,bkh->bqh', wts, vs,
                               preferred_element_type=jnp.float32))
    out = jnp.concatenate(outs, axis=1)
    out = jnp.where(out >= 0, out, NEG_SLOPE * out)
    z = out + x
    mean = jnp.mean(z, axis=-1, keepdims=True)
    var = jnp.mean((z - mean) ** 2, axis=-1, keepdims=True)
    return (z - mean) * jax.lax.rsqrt(var + LN_EPS) * gamma[0] + beta[0]


if __name__ == "__main__":
    B, S, H = 2, 16, 32
    window_size = 8
    sparsity_threshold = 0.5

    key = jax.random.PRNGKey(0)
    keys = jax.random.split(key, 8)
    x = jax.random.normal(keys[0], (B, S, H), dtype=jnp.float32)

    bound = 1.0 / math.sqrt(H)  # mimic nn.Linear's uniform init range
    wq = jax.random.uniform(keys[1], (H, H), jnp.float32, -bound, bound)
    wk = jax.random.uniform(keys[2], (H, H), jnp.float32, -bound, bound)
    wv = jax.random.uniform(keys[3], (H, H), jnp.float32, -bound, bound)
    bq = jax.random.uniform(keys[4], (1, H), jnp.float32, -bound, bound)
    bk = jax.random.uniform(keys[5], (1, H), jnp.float32, -bound, bound)
    bv = jax.random.uniform(keys[6], (1, H), jnp.float32, -bound, bound)
    gamma = jnp.ones((1, H), jnp.float32)   # LayerNorm weight init
    beta = jnp.zeros((1, H), jnp.float32)   # LayerNorm bias init
    params = (wq, bq, wk, bk, wv, bv, gamma, beta)

    out = local_sparse_attention(x, params, window_size, sparsity_threshold)
    out = jax.block_until_ready(out)

    ref = _reference(x, params, window_size, sparsity_threshold)
    assert out.shape == (B, S, H)
    # bf16-matmul kernel vs bf16-matmul reference (softmax uses EUP approx
    # reciprocal in the kernel, hence the relaxed tolerance).
    assert jnp.allclose(out, ref, rtol=2e-2, atol=2e-2), "mismatch vs reference"

    print("KERNEL_OK")
</pallas_src>

<mosaic_0001>
module attributes {stable_mosaic.version = 11 : i64} {
  func.func @_lsa_kernel(%arg0: i32, %arg1: memref<2x8x128xf32, #tpu.memory_space<vmem>>, %arg2: memref<128x384xbf16, #tpu.memory_space<vmem>>, %arg3: memref<1x384xf32, #tpu.memory_space<vmem>>, %arg4: memref<1x128xf32, #tpu.memory_space<vmem>>, %arg5: memref<1x128xf32, #tpu.memory_space<vmem>>, %arg6: memref<2x8x128xf32, #tpu.memory_space<vmem>>) attributes {dimension_semantics = [#tpu.dimension_semantics<parallel>], iteration_bounds = array<i64: 2>, scalar_prefetch = 0 : i64, scratch_operands = 0 : i64, tpu.core_type = #tpu.core_type<tc>, window_params = [{transform_indices = @transform_0, window_bounds = array<i64: 2, 8, 128>}, {pipeline_mode = #tpu.pipeline_mode<synchronous>, transform_indices = @transform_1, window_bounds = array<i64: 128, 384>}, {pipeline_mode = #tpu.pipeline_mode<synchronous>, transform_indices = @transform_2, window_bounds = array<i64: 1, 384>}, {pipeline_mode = #tpu.pipeline_mode<synchronous>, transform_indices = @transform_3, window_bounds = array<i64: 1, 128>}, {pipeline_mode = #tpu.pipeline_mode<synchronous>, transform_indices = @transform_4, window_bounds = array<i64: 1, 128>}, {transform_indices = @transform_5, window_bounds = array<i64: 2, 8, 128>}]} {
    %c0 = arith.constant 0 : index
    %c0_0 = arith.constant 0 : index
    %c0_1 = arith.constant 0 : index
    %0 = vector.load %arg1[%c0, %c0_0, %c0_1] : memref<2x8x128xf32, #tpu.memory_space<vmem>>, vector<2x8x128xf32>
    %1 = vector.shape_cast %0 : vector<2x8x128xf32> to vector<16x128xf32>
    %2 = arith.truncf %1 : vector<16x128xf32> to vector<16x128xbf16>
    %c0_2 = arith.constant 0 : index
    %c0_3 = arith.constant 0 : index
    %3 = vector.load %arg2[%c0_2, %c0_3] : memref<128x384xbf16, #tpu.memory_space<vmem>>, vector<128x384xbf16>
    %cst = arith.constant dense<0.000000e+00> : vector<16x384xf32>
    %4 = tpu.matmul %2, %3, %cst {dimension_numbers = #tpu.dot_dimension_numbers<[1], [0], [0], [1], [0, 0, 1, 1], [], []>} : vector<16x128xbf16>, vector<128x384xbf16>, vector<16x384xf32> -> vector<16x384xf32>
    %c0_4 = arith.constant 0 : index
    %c0_5 = arith.constant 0 : index
    %5 = vector.load %arg3[%c0_4, %c0_5] : memref<1x384xf32, #tpu.memory_space<vmem>>, vector<1x384xf32>
    %6 = vector.broadcast %5 : vector<1x384xf32> to vector<16x384xf32>
    %7 = arith.addf %4, %6 : vector<16x384xf32>
    %8 = vector.extract_strided_slice %7 {offsets = [0, 0], sizes = [16, 128], strides = [1, 1]} : vector<16x384xf32> to vector<16x128xf32>
    %9 = arith.truncf %8 : vector<16x128xf32> to vector<16x128xbf16>
    %10 = vector.shape_cast %9 : vector<16x128xbf16> to vector<2x8x128xbf16>
    %11 = vector.extract_strided_slice %7 {offsets = [0, 128], sizes = [16, 128], strides = [1, 1]} : vector<16x384xf32> to vector<16x128xf32>
    %12 = arith.truncf %11 : vector<16x128xf32> to vector<16x128xbf16>
    %13 = vector.shape_cast %12 : vector<16x128xbf16> to vector<2x8x128xbf16>
    %14 = vector.extract_strided_slice %7 {offsets = [0, 256], sizes = [16, 128], strides = [1, 1]} : vector<16x384xf32> to vector<16x128xf32>
    %15 = arith.truncf %14 : vector<16x128xf32> to vector<16x128xbf16>
    %16 = vector.shape_cast %15 : vector<16x128xbf16> to vector<2x8x128xbf16>
    "tpu.trace_start"() <{level = 10 : i32, message = "gqh,gkh->gqk"}> : () -> ()
    %cst_6 = arith.constant dense<0.000000e+00> : vector<2x8x8xf32>
    %17 = tpu.matmul %10, %13, %cst_6 {dimension_numbers = #tpu.dot_dimension_numbers<[2], [2], [1], [1], [0, 0, 0, 1, 1, 1], [0], [0]>} : vector<2x8x128xbf16>, vector<2x8x128xbf16>, vector<2x8x8xf32> -> vector<2x8x8xf32>
    "tpu.trace_stop"() : () -> ()
    %cst_7 = arith.constant 0.176776692 : f32
    %18 = vector.broadcast %cst_7 : f32 to vector<2x8x8xf32>
    %19 = arith.mulf %17, %18 : vector<2x8x8xf32>
    %cst_8 = arith.constant 0x7F800000 : f32
    %20 = vector.broadcast %cst_8 : f32 to vector<2x8x1xf32>
    %21 = vector.broadcast %20 : vector<2x8x1xf32> to vector<2x8x8xf32>
    %22 = arith.cmpf olt, %19, %21 : vector<2x8x8xf32>
    %cst_9 = arith.constant 0xFF800000 : f32
    %23 = vector.broadcast %cst_9 : f32 to vector<2x8x8xf32>
    %24 = arith.select %22, %19, %23 : vector<2x8x8xi1>, vector<2x8x8xf32>
    %cst_10 = arith.constant dense<0xFF800000> : vector<2x8xf32>
    %25 = vector.multi_reduction <maximumf>, %24, %cst_10 [2] : vector<2x8x8xf32> to vector<2x8xf32>
    %26 = vector.shape_cast %25 : vector<2x8xf32> to vector<2x8x1xf32>
    %27 = vector.broadcast %26 : vector<2x8x1xf32> to vector<2x8x8xf32>
    %28 = arith.cmpf olt, %19, %27 : vector<2x8x8xf32>
    %cst_11 = arith.constant 0xFF800000 : f32
    %29 = vector.broadcast %cst_11 : f32 to vector<2x8x8xf32>
    %30 = arith.select %28, %19, %29 : vector<2x8x8xi1>, vector<2x8x8xf32>
    %cst_12 = arith.constant dense<0xFF800000> : vector<2x8xf32>
    %31 = vector.multi_reduction <maximumf>, %30, %cst_12 [2] : vector<2x8x8xf32> to vector<2x8xf32>
    %32 = vector.shape_cast %31 : vector<2x8xf32> to vector<2x8x1xf32>
    %33 = vector.broadcast %32 : vector<2x8x1xf32> to vector<2x8x8xf32>
    %34 = arith.cmpf olt, %19, %33 : vector<2x8x8xf32>
    %cst_13 = arith.constant 0xFF800000 : f32
    %35 = vector.broadcast %cst_13 : f32 to vector<2x8x8xf32>
    %36 = arith.select %34, %19, %35 : vector<2x8x8xi1>, vector<2x8x8xf32>
    %cst_14 = arith.constant dense<0xFF800000> : vector<2x8xf32>
    %37 = vector.multi_reduction <maximumf>, %36, %cst_14 [2] : vector<2x8x8xf32> to vector<2x8xf32>
    %38 = vector.shape_cast %37 : vector<2x8xf32> to vector<2x8x1xf32>
    %39 = vector.broadcast %38 : vector<2x8x1xf32> to vector<2x8x8xf32>
    %40 = arith.cmpf olt, %19, %39 : vector<2x8x8xf32>
    %cst_15 = arith.constant 0xFF800000 : f32
    %41 = vector.broadcast %cst_15 : f32 to vector<2x8x8xf32>
    %42 = arith.select %40, %19, %41 : vector<2x8x8xi1>, vector<2x8x8xf32>
    %cst_16 = arith.constant dense<0xFF800000> : vector<2x8xf32>
    %43 = vector.multi_reduction <maximumf>, %42, %cst_16 [2] : vector<2x8x8xf32> to vector<2x8xf32>
    %44 = vector.shape_cast %43 : vector<2x8xf32> to vector<2x8x1xf32>
    %45 = vector.broadcast %44 : vector<2x8x1xf32> to vector<2x8x8xf32>
    %46 = arith.cmpf oge, %19, %45 : vector<2x8x8xf32>
    %cst_17 = arith.constant 0xFF800000 : f32
    %47 = vector.broadcast %cst_17 : f32 to vector<2x8x8xf32>
    %48 = arith.select %46, %19, %47 : vector<2x8x8xi1>, vector<2x8x8xf32>
    %cst_18 = arith.constant dense<0xFF800000> : vector<2x8xf32>
    %49 = vector.multi_reduction <maximumf>, %48, %cst_18 [2] : vector<2x8x8xf32> to vector<2x8xf32>
    %50 = vector.shape_cast %49 : vector<2x8xf32> to vector<2x8x1xf32>
    %51 = vector.broadcast %50 : vector<2x8x1xf32> to vector<2x8x8xf32>
    %52 = arith.subf %48, %51 : vector<2x8x8xf32>
    %53 = math.exp %52 : vector<2x8x8xf32>
    %cst_19 = arith.constant dense<0.000000e+00> : vector<2x8xf32>
    %54 = vector.multi_reduction <add>, %53, %cst_19 [2] : vector<2x8x8xf32> to vector<2x8xf32>
    %55 = vector.shape_cast %54 : vector<2x8xf32> to vector<2x8x1xf32>
    %56 = tpu.reciprocal %55 {approx = true} : vector<2x8x1xf32> -> vector<2x8x1xf32>
    %57 = vector.broadcast %56 : vector<2x8x1xf32> to vector<2x8x8xf32>
    %58 = arith.mulf %53, %57 : vector<2x8x8xf32>
    %59 = arith.truncf %58 : vector<2x8x8xf32> to vector<2x8x8xbf16>
    "tpu.trace_start"() <{level = 10 : i32, message = "gqk,gkh->gqh"}> : () -> ()
    %cst_20 = arith.constant dense<0.000000e+00> : vector<2x8x128xf32>
    %60 = tpu.matmul %59, %16, %cst_20 {dimension_numbers = #tpu.dot_dimension_numbers<[2], [1], [1], [2], [0, 0, 0, 1, 1, 2], [0], [0]>} : vector<2x8x8xbf16>, vector<2x8x128xbf16>, vector<2x8x128xf32> -> vector<2x8x128xf32>
    %cst_21 = arith.constant 0.000000e+00 : f32
    "tpu.trace_stop"() : () -> ()
    %61 = vector.broadcast %cst_21 : f32 to vector<2x8x128xf32>
    %62 = arith.cmpf oge, %60, %61 : vector<2x8x128xf32>
    %cst_22 = arith.constant 0.00999999977 : f32
    %63 = vector.broadcast %cst_22 : f32 to vector<2x8x128xf32>
    %64 = arith.mulf %63, %60 : vector<2x8x128xf32>
    %65 = arith.select %62, %60, %64 : vector<2x8x128xi1>, vector<2x8x128xf32>
    %66 = arith.addf %65, %0 : vector<2x8x128xf32>
    %cst_23 = arith.constant dense<0.000000e+00> : vector<2x8xf32>
    %67 = vector.multi_reduction <add>, %66, %cst_23 [2] : vector<2x8x128xf32> to vector<2x8xf32>
    %68 = vector.shape_cast %67 : vector<2x8xf32> to vector<2x8x1xf32>
    %cst_24 = arith.constant 3.125000e-02 : f32
    %69 = vector.broadcast %cst_24 : f32 to vector<2x8x1xf32>
    %70 = arith.mulf %68, %69 : vector<2x8x1xf32>
    %71 = tpu.iota {dimensions = array<i32: 2>} : vector<1x1x128xi32>
    %c32_i32 = arith.constant 32 : i32
    %72 = vector.broadcast %c32_i32 : i32 to vector<1x1x128xi32>
    %73 = arith.cmpi slt, %71, %72 : vector<1x1x128xi32>
    %74 = arith.extui %73 : vector<1x1x128xi1> to vector<1x1x128xi32>
    %75 = arith.sitofp %74 : vector<1x1x128xi32> to vector<1x1x128xf32>
    %76 = vector.broadcast %70 : vector<2x8x1xf32> to vector<2x8x128xf32>
    %77 = arith.subf %66, %76 : vector<2x8x128xf32>
    %78 = vector.broadcast %75 : vector<1x1x128xf32> to vector<2x8x128xf32>
    %79 = arith.mulf %77, %78 : vector<2x8x128xf32>
    %80 = arith.mulf %79, %79 : vector<2x8x128xf32>
    %cst_25 = arith.constant dense<0.000000e+00> : vector<2x8xf32>
    %81 = vector.multi_reduction <add>, %80, %cst_25 [2] : vector<2x8x128xf32> to vector<2x8xf32>
    %82 = vector.shape_cast %81 : vector<2x8xf32> to vector<2x8x1xf32>
    %cst_26 = arith.constant 3.125000e-02 : f32
    %83 = vector.broadcast %cst_26 : f32 to vector<2x8x1xf32>
    %84 = arith.mulf %82, %83 : vector<2x8x1xf32>
    %cst_27 = arith.constant 9.99999974E-6 : f32
    %85 = vector.broadcast %cst_27 : f32 to vector<2x8x1xf32>
    %86 = arith.addf %84, %85 : vector<2x8x1xf32>
    %87 = math.rsqrt %86 : vector<2x8x1xf32>
    %88 = vector.broadcast %87 : vector<2x8x1xf32> to vector<2x8x128xf32>
    %89 = arith.mulf %79, %88 : vector<2x8x128xf32>
    %c0_28 = arith.constant 0 : index
    %c0_29 = arith.constant 0 : index
    %90 = vector.load %arg4[%c0_28, %c0_29] : memref<1x128xf32, #tpu.memory_space<vmem>>, vector<1x128xf32>
    %91 = vector.shape_cast %90 : vector<1x128xf32> to vector<1x1x128xf32>
    %92 = vector.broadcast %91 : vector<1x1x128xf32> to vector<2x8x128xf32>
    %93 = arith.mulf %89, %92 : vector<2x8x128xf32>
    %c0_30 = arith.constant 0 : index
    %c0_31 = arith.constant 0 : index
    %94 = vector.load %arg5[%c0_30, %c0_31] : memref<1x128xf32, #tpu.memory_space<vmem>>, vector<1x128xf32>
    %95 = vector.shape_cast %94 : vector<1x128xf32> to vector<1x1x128xf32>
    %96 = vector.broadcast %95 : vector<1x1x128xf32> to vector<2x8x128xf32>
    %97 = arith.addf %93, %96 : vector<2x8x128xf32>
    %c0_32 = arith.constant 0 : index
    %c0_33 = arith.constant 0 : index
    %c0_34 = arith.constant 0 : index
    %98 = vector.load %arg6[%c0_32, %c0_33, %c0_34] : memref<2x8x128xf32, #tpu.memory_space<vmem>>, vector<2x8x128xf32>
    tpu.vector_store %arg6[%c0_32, %c0_33, %c0_34], %97 {strides = array<i32>} : memref<2x8x128xf32, #tpu.memory_space<vmem>>, vector<2x8x128xf32>,
    return
  }
  func.func @transform_0(%arg0: i32) -> (i32, i32, i32) {
    %c0_i32 = arith.constant 0 : i32
    %c0_i32_0 = arith.constant 0 : i32
    %c0_i32_1 = arith.constant 0 : i32
    return %c0_i32, %arg0, %c0_i32_0 : i32, i32, i32
  }
  func.func @transform_1(%arg0: i32) -> (i32, i32) {
    %c0_i32 = arith.constant 0 : i32
    %c0_i32_0 = arith.constant 0 : i32
    %c0_i32_1 = arith.constant 0 : i32
    return %c0_i32, %c0_i32_0 : i32, i32
  }
  func.func @transform_2(%arg0: i32) -> (i32, i32) {
    %c0_i32 = arith.constant 0 : i32
    %c0_i32_0 = arith.constant 0 : i32
    %c0_i32_1 = arith.constant 0 : i32
    return %c0_i32, %c0_i32_0 : i32, i32
  }
  func.func @transform_3(%arg0: i32) -> (i32, i32) {
    %c0_i32 = arith.constant 0 : i32
    %c0_i32_0 = arith.constant 0 : i32
    %c0_i32_1 = arith.constant 0 : i32
    return %c0_i32, %c0_i32_0 : i32, i32
  }
  func.func @transform_4(%arg0: i32) -> (i32, i32) {
    %c0_i32 = arith.constant 0 : i32
    %c0_i32_0 = arith.constant 0 : i32
    %c0_i32_1 = arith.constant 0 : i32
    return %c0_i32, %c0_i32_0 : i32, i32
  }
  func.func @transform_5(%arg0: i32) -> (i32, i32, i32) {
    %c0_i32 = arith.constant 0 : i32
    %c0_i32_0 = arith.constant 0 : i32
    %c0_i32_1 = arith.constant 0 : i32
    return %c0_i32, %arg0, %c0_i32_0 : i32, i32, i32
  }
}

</mosaic_0001>

<bundles_post_ra>
// kernel: tpu_custom_call.1
= control target key start
LH: loop header
LB: loop body
LE: loop exit
PB: predicated region body
PF: predicated region fallthrough
CT: control target
= control target key end

     0   :  { %10 = vsyncpa [#allocation3], 0  ;;  %s1584_s0 = inlined_call_operand.hbm [shape: f32[2,16,128], index: 0, kind: input, shape index: {}]   ;;  %s1585_s1 = inlined_call_operand.hbm [shape: bf16[128,384], index: 1, kind: input, shape index: {}]   ;;  %s1586_s2 = inlined_call_operand.vmem [shape: f32[1,384], index: 2, kind: input, shape index: {}]   ;;  %s1587_s3 = inlined_call_operand.vmem [shape: f32[1,128], index: 3, kind: input, shape index: {}]   ;;  %s1588_s4 = inlined_call_operand.vmem [shape: f32[1,128], index: 4, kind: input, shape index: {}]   ;;  %s1589_s5 = inlined_call_operand.hbm [shape: f32[2,16,128], index: 5, kind: output, shape index: {}]  }
   0x1   :  { %12 = vsyncpa [#allocation3 + $0x1], 0 }
   0x2   :  { %13 = vsyncpa [#allocation6], 0 }
   0x3   :  { %14 = vsyncpa [#allocation4], 0 }
   0x4   :  { %16 = vsyncpa [#allocation4 + $0x1], 0  ;;  %s1337_s18 = smov 0   ;;  %s1339_s19 = smov 0  }
   0x5   :  { %s1341_s20 = smov 0   ;;  %s1343_s21 = smov 0  }
   0x6 LB: > { %s1358_s22 = sadd.s32 4294967295, %s1291_s21   ;;  %s941_s23 = sadd.s32 4294967294, %s1291_s21   ;;  %s1291_s21 = sphi %s1343_s21, %s1611_s21   ;;  %s1287_s20 = sphi %s1341_s20, %s1610_s20   ;;  %s1283_s19 = sphi %s1339_s19, %s1609_s19   ;;  %s1279_s18 = sphi %s1337_s18, %s1608_s18  }
   0x7   : > { %s1362_s24 = sadd.s32 1, %s1291_s21   ;;  %s29_s25 = sadd.s32 1, %s1287_s20 }
   0x8   : > { %s26_s26 = ssub.s32 %s1291_s21, %s1362_s24  ;;  %p36_p0 = scmp.ne.s32.totalorder %s1287_s20, %s1283_s19 }
   0x9   : > { %p27_p1 = scmp.eq.s32.totalorder %s26_s26, 0  ;;  %p37_p2 = scmp.eq.s32.totalorder %s1291_s21, 0 }
   0xa   : > { %p42_p3 = scmp.ne.s32.totalorder %s1283_s19, %s1279_s18  ;;  %p1593_p4 = scmp.eq.s32.totalorder %s1358_s22, 0 }
   0xb   : > { %s1374_s27 = scalar_select %p27_p1, %s1287_s20, %s29_s25  }
   0xc   : > { %p1376_p5 = por %p37_p2, %p36_p0  ;;  %p1382_p6 = por %p1593_p4, %p42_p3 }
   0xd   : > { %p150_p7 = scmp.eq.s32.totalorder %s1358_s22, 1  ;;  %p156_p8 = scmp.eq.s32.totalorder %s941_s23, 1 }
   0xe   : > { %s1595_s29 = scalar_select %p1382_p6, 1, 0 }
   0xf   : > { %p942_p9 = scmp.ge.s32.totalorder %s1291_s21, 1  ;;  %p163_p10 = scmp.lt.s32.totalorder %s1291_s21, 3 }
  0x10   : > { %p1389_p11 = por %p150_p7, %p36_p0  ;;  %p1393_p12 = por %p156_p8, %p42_p3 }
  0x11   : > { %p1397_p13 = pnand %p942_p9, %p163_p10  ;;  %s1293_s8 = smov [#allocation5]  }
  0x12   : > { %s1596_s30 = scalar_select %p1389_p11, 1, 0 }
  0x13   : > { %s1597_s6 = scalar_select %p1393_p12, 1, 0 }
  0x14   : > { %s1598_s7 = scalar_select %p1397_p13, 1, 0 }
  0x15   : > { %p1065_p1 = pneg %p1397_p13  ;;  %s175_s9 = sshll.u32 %s1293_s8, 4  ;;  %s176_s9 = int_to_ptr.vmem [resolvable:$true] %s175_s9 }
  0x16   : > { %p1078_p3 = scmp.lt.s32.totalorder %s1291_s21, 2  ;;  %s198_s11 = sand.u32 1, %s1287_s20  }
  0x17   : > { %p1405_p2 = pnand %p1065_p1, %p1593_p4  ;;  %s1180_s12 = scalar_lea.vmem %s176_s9, 3072 }
  0x18   : > { %p1181_p8 = scmp.ne.s32.totalorder %s176_s9, %s1180_s12  ;;  %p1188_p12 = scmp.lt.s32.totalorder %s176_s9, %s176_s9 }
  0x19   : > { %p1171_p7 = pneg %p1405_p2  ;;  %p1189_p11 = scmp.lt.s32.totalorder %s1180_s12, %s1180_s12 }
  0x1b   : > { %p1183_p9 = pnand %p1181_p8, %p1171_p7  ;;  %p1190_p6 = por %p1189_p11, %p1188_p12 }
  0x1d   : > { %p1184_p10 = pneg %p1183_p9 }
  0x1f   : > { %p1191_p13 = pnand %p1190_p6, %p1184_p10 }
  0x21   : > { %1194 = shalt.err (!%p1191_p13)
}
  0x22   : > { %s1294_s13 = smov 192   ;;  %s1295_s14 = smov 12  }
  0x23   : > { %1068 = dma.hbm_to_vmem [thread:$0]  (!%p1405_p2), %s1585_s1, 3072, %s176_s9, [#allocation6], %s1294_s13, %s1294_s13, %s1295_s14  }
  0x24   : > { %p1423_p1 = pnand %p1078_p3, %p1376_p5  ;;  %s945_s23 = sshll.u32 %s198_s11, 4 }
  0x25   : > { %s946_s25 = sshll.u32 %s1291_s21, 7  ;;  %s202_s10 = scalar_lea.vmem [#allocation2], %s945_s23 }
  0x26   : > { %s1431_s12 = scalar_lea.hbm %s1584_s0, %s946_s25  ;;  %s208_s15 = sshll.u32 %s202_s10, 4  ;;  %s1433_s15 = int_to_ptr.vmem [resolvable:$true] %s208_s15 }
  0x27   : > { %s1435_s28 = scalar_lea.sflag [#allocation3], %s198_s11  ;;  %s1195_s9 = scalar_lea.hbm %s1431_s12, 256 }
  0x28   : > { %p1196_p5 = scmp.ne.s32.totalorder %s1431_s12, %s1195_s9  ;;  %p1197_p6 = pneg %p1423_p1 }
  0x29   : > { %s1200_s16 = scalar_lea.hbm %s1584_s0, 512  ;;  %p1201_p13 = scmp.lt.s32.totalorder %s1431_s12, %s1584_s0 }
  0x2a   : > { %p1198_p11 = pnand %p1197_p6, %p1196_p5  ;;  %p1202_p2 = scmp.lt.s32.totalorder %s1200_s16, %s1195_s9 }
  0x2c   : > { %p1199_p12 = pneg %p1198_p11  ;;  %p1203_p3 = por %p1202_p2, %p1201_p13 }
  0x2e   : > { %p1204_p7 = pnand %p1203_p3, %p1199_p12 }
  0x30   : > { %1207 = shalt.err (!%p1204_p7)
}
  0x31   : > { %s1208_s11 = scalar_lea.vmem %s1433_s15, 256  ;;  %s1296_s23 = smov [#allocation2]  }
  0x32   : > { %p1209_p8 = scmp.ne.s32.totalorder %s1433_s15, %s1208_s11  ;;  %s1213_s8 = sshll.u32 %s1296_s23, 4  ;;  %s1214_s8 = int_to_ptr.vmem [resolvable:$false] %s1213_s8 }
  0x33   : > { %s1215_s10 = scalar_lea.vmem %s1214_s8, 512  ;;  %p1216_p5 = scmp.lt.s32.totalorder %s1433_s15, %s1214_s8 }
  0x34   : > { %p1211_p9 = pnand %p1209_p8, %p1197_p6  ;;  %p1217_p11 = scmp.lt.s32.totalorder %s1215_s10, %s1208_s11 }
  0x36   : > { %p1212_p10 = pneg %p1211_p9  ;;  %p1218_p0 = por %p1217_p11, %p1216_p5 }
  0x38   : > { %p1219_p4 = pnand %p1218_p0, %p1212_p10 }
  0x3a   : > { %1222 = shalt.err (!%p1219_p4)
}
  0x3b   : > { %s1297_s9 = smov 256   ;;  %s1298_s13 = smov 128  }
  0x3c   : > { %s1299_s14 = smov 8   ;;  %p1601_p6 = scmp.ne.s32.totalorder %s1598_s7, 0 }
  0x3d   : > { %1072 = dma.hbm_to_vmem [thread:$0]  (!%p1423_p1), %s1431_s12, 256, %s1433_s15, %s1435_s28, %s1297_s9, %s1298_s13, %s1299_s14  }
  0x3e   : > { %220 = sbr.rel (%p1601_p6) target bundleno = 1911 (0x777), region = 40  ;;  %s1459_s16 = sand.u32 (!%p1601_p6), 1, %s1283_s19  }
  0x3f   : > { %s948_s25 = sshll.u32 (!%p1601_p6), %s1459_s16, 4  ;;  %s223_s26 = scalar_lea.sflag (!%p1601_p6), [#allocation3], %s1459_s16 }
  0x40   : > { %s1465_s11 = scalar_lea.vmem (!%p1601_p6), [#allocation2], %s948_s25  ;;  %p1602_p4 = scmp.ne.s32.totalorder (!%p1601_p6), %s1595_s29, 0 }
  0x43   : > { %1266 = dma.done.wait (%p1602_p4), %s223_s26, 256  }
  0x44   : > { %1268 = vsyncadd (%p1602_p4), %s223_s26, 4294967040  ;;  %p1603_p0 = scmp.eq.s32.totalorder %s1358_s22, 0 }
  0x46   : > { %1270 = dma.done.wait (%p1603_p0), [#allocation6], 3072   ;;  %p1604_p1 = pmov %p1603_p0 }
  0x47   : > { %v1300_v0 = vmov 0   ;;  %v1301_v1 = vmov 0.0   ;;  %v1125_v2 = vld [vmem:[#allocation5 + $0xac] ss:$12 sps:$4 sm:$0xff]   ;;  %v1127_v3 = vld [vmem:[#allocation5 + $0xa8] ss:$12 sps:$4 sm:$0xff]   ;;  %v295_v29 = vlaneseq }
  0x48   : > { %1272 = vsyncadd (%p1604_p1), [#allocation6], 4294964224  ;;  %470 = vmatprep.mubr.bf16.mxu0 %v1300_v0  ;;  %1013 = vmatprep.subr.bf16.mxu1 %v1301_v1  ;;  %v1128_v4 = vld [vmem:[#allocation5 + $0x94] ss:$12 sps:$4 sm:$0xff]   ;;  %v1130_v5 = vld [vmem:[#allocation5 + $0x90] ss:$12 sps:$4 sm:$0xff]  }
  0x49   : > { %438 = vmatprep.subr.bf16.mxu0 %v1125_v2  ;;  %v1131_v6 = vld [vmem:[#allocation5 + $0x7c] ss:$12 sps:$4 sm:$0xff]   ;;  %v1133_v7 = vld [vmem:[#allocation5 + $0x78] ss:$12 sps:$4 sm:$0xff]   ;;  %v1136_v9 = vld [vmem:[#allocation5 + $0x60] ss:$12 sps:$4 sm:$0xff]  }
  0x4a   : > { %439 = vmatpush1.bf16.msra.mxu0 %v1127_v3  ;;  %v1134_v8 = vld [vmem:[#allocation5 + $0x64] ss:$12 sps:$4 sm:$0xff]   ;;  %v1137_v10 = vld [vmem:[#allocation5 + $0x4c] ss:$12 sps:$4 sm:$0xff]   ;;  %v1139_v13 = vld [vmem:[#allocation5 + $0x48] ss:$12 sps:$4 sm:$0xff]  }
  0x4b   : > { %440 = vmatprep.subr.bf16.mxu0 %v1128_v4  ;;  %v1149_v11 = vld [vmem:[#allocation5 + $0xb0] ss:$12 sps:$4 sm:$0xff]   ;;  %v1150_v12 = vld [vmem:[#allocation5 + $0x98] ss:$12 sps:$4 sm:$0xff]   ;;  %v1140_v14 = vld [vmem:[#allocation5 + $0x34] ss:$12 sps:$4 sm:$0xff]  }
  0x4c   : > { %1014 = vmatpush3.bf16.msra.mxu1 %v1149_v11  ;;  %v1151_v15 = vld [vmem:[#allocation5 + $0x80] ss:$12 sps:$4 sm:$0xff]   ;;  %v1142_v16 = vld [vmem:[#allocation5 + $0x30] ss:$12 sps:$4 sm:$0xff]   ;;  %v1152_v18 = vld [vmem:[#allocation5 + $0x68] ss:$12 sps:$4 sm:$0xff]  }
  0x4d   : > { %1015 = vmatprep.subr.bf16.mxu1 %v1301_v1  ;;  %v1143_v17 = vld [vmem:[#allocation5 + $0x1c] ss:$12 sps:$4 sm:$0xff]   ;;  %v1145_v19 = vld [vmem:[#allocation5 + $0x18] ss:$12 sps:$4 sm:$0xff]   ;;  %v1148_v22 = vld [vmem:[#allocation5] ss:$12 sps:$4 sm:$0xff]  }
  0x4e   : > { %441 = vmatpush1.bf16.msra.mxu0 %v1130_v5  ;;  %v1146_v20 = vld [vmem:[#allocation5 + $0x4] ss:$12 sps:$4 sm:$0xff]   ;;  %v1483_v24 = vld [vmem:[%s1465_s11 + $0x8] sm:$0xff]  ;;  %vm1302_vm0 = vmmov 0   ;;  %v296_v30 = vshrl.u32 %v295_v29, 7  ;;  %vm698_vm1 = vcmask 1043456  }
  0x4f   : > { %442 = vmatprep.subr.bf16.mxu0 %v1131_v6  ;;  %v1153_v21 = vld [vmem:[#allocation5 + $0x50] ss:$12 sps:$4 sm:$0xff]   ;;  %v1154_v26 = vld [vmem:[#allocation5 + $0x38] ss:$12 sps:$4 sm:$0xff]   ;;  %v1155_v27 = vld [vmem:[#allocation5 + $0x20] ss:$12 sps:$4 sm:$0xff]   ;;  %1029 = vmatprep.mubr.msk.bf16.mxu1 %vm1302_vm0, %v1301_v1 }
  0x50   : > { %1016 = vmatpush3.bf16.msra.mxu1 %v1150_v12  ;;  %v1480_v23 = vld [vmem:[%s1465_s11] sm:$0xff]  ;;  %v301_v31 = vsub.s32 1, %v296_v30  ;;  %v297_v34 = vsub.s32 0, %v296_v30  ;;  %v305_v48 = vsub.s32 2, %v296_v30  ;;  %vm630_vm2 = vcmask 64512   ;;  %s987_s23 = sshll.u32 %s1358_s22, 7 }
  0x51   : > { %1017 = vmatprep.subr.bf16.mxu1 %v1301_v1  ;;  %v260_v25 = vpack.c.bf16 %v1483_v24, %v1480_v23  ;;  %v1156_v28 = vld [vmem:[#allocation5 + $0x8] ss:$12 sps:$4 sm:$0xff]   ;;  %v293_v32 = vld [vmem:[%s1586_s2] sm:$0x7]  ;;  %s256_s8 = scalar_lea.vmem [#allocation7], %s948_s25  ;;  %s1539_s14 = scalar_lea.hbm %s1589_s5, %s987_s23 }
  0x52   : > { %443 = vmatpush1.bf16.msra.mxu0 %v1133_v7  ;;  %v302_v33 = vrot.slane %v293_v32, %v301_v31  ;;  %v298_v38 = vrot.slane %v293_v32, %v297_v34  ;;  %v306_v49 = vrot.slane %v293_v32, %v305_v48  ;;  %s858_s10 = sshll.u32 %s256_s8, 4  ;;  %s846_s22 = scalar_lea.sflag [#allocation4], %s1459_s16  ;;  %s1541_s10 = int_to_ptr.vmem [resolvable:$true] %s858_s10 }
  0x53   : > { %444 = vmatprep.subr.bf16.mxu0 %v1134_v8  ;;  %s1223_s26 = scalar_lea.vmem %s1541_s10, 256  ;;  %p1605_p13 = scmp.ne.s32.totalorder %s1596_s30, 0 }
  0x54   : > { %1018 = vmatpush3.bf16.msra.mxu1 %v1151_v15  ;;  %p1224_p12 = scmp.ne.s32.totalorder %s1541_s10, %s1223_s26  ;;  %s1303_s25 = smov [#allocation7]  }
  0x55   : > { %1019 = vmatprep.subr.bf16.mxu1 %v1301_v1  ;;  %s1227_s11 = sshll.u32 %s1303_s25, 4  ;;  %s1228_s11 = int_to_ptr.vmem [resolvable:$false] %s1227_s11 }
  0x56   : > { %445 = vmatpush1.bf16.msra.mxu0 %v1136_v9  ;;  %p1225_p2 = pnand %p1224_p12, %p1605_p13  ;;  %s1229_s29 = scalar_lea.vmem %s1228_s11, 512 }
  0x57   : > { %446 = vmatprep.subr.bf16.mxu0 %v1137_v10  ;;  %p1230_p7 = scmp.lt.s32.totalorder %s1541_s10, %s1228_s11  ;;  %p1231_p8 = scmp.lt.s32.totalorder %s1229_s29, %s1223_s26 }
  0x58   : > { %1020 = vmatpush3.bf16.msra.mxu1 %v1152_v18  ;;  %p1226_p3 = pneg %p1225_p2 }
  0x59   : > { %1021 = vmatprep.subr.bf16.mxu1 %v1301_v1  ;;  %p1232_p9 = por %p1231_p8, %p1230_p7 }
  0x5a   : > { %447 = vmatpush1.bf16.msra.mxu0 %v1139_v13 }
  0x5b   : > { %448 = vmatprep.subr.bf16.mxu0 %v1140_v14  ;;  %p1233_p10 = pnand %p1232_p9, %p1226_p3 }
  0x5c   : > { %1022 = vmatpush3.bf16.msra.mxu1 %v1153_v21 }
  0x5d   : > { %1023 = vmatprep.subr.bf16.mxu1 %v1301_v1 }
  0x5e   : > { %449 = vmatpush1.bf16.msra.mxu0 %v1142_v16 }
  0x5f   : > { %450 = vmatprep.subr.bf16.mxu0 %v1143_v17 }
  0x60   : > { %1024 = vmatpush3.bf16.msra.mxu1 %v1154_v26 }
  0x61   : > { %1025 = vmatprep.subr.bf16.mxu1 %v1301_v1 }
  0x62   : > { %451 = vmatpush1.bf16.msra.mxu0 %v1145_v19 }
  0x63   : > { %452 = vmatprep.subr.bf16.mxu0 %v1146_v20 }
  0x64   : > { %1026 = vmatpush3.bf16.msra.mxu1 %v1155_v27 }
  0x65   : > { %1027 = vmatprep.subr.bf16.mxu1 %v1301_v1 }
  0x66   : > { %453 = vmatpush1.bf16.msra.mxu0 %v1148_v22 }
  0x67   : > { %1033 = vmatprep.subr.bf16.mxu0 %v1301_v1 }
  0x68   : > { %1028 = vmatpush3.bf16.msra.mxu1 %v1156_v28 }
  0x69   : > { %471 = vmatmul.mubr.bf16.vlgmr.msra.gmra.mxu0 %v260_v25  ;;  %1039 = vmatprep.subr.bf16.mxu1 %v1301_v1 }
  0x6a   : > { %1035 = vmatprep.mubr.msk.bf16.mxu0 %vm1302_vm0, %v1301_v1 }
  0x6b   : > { %1030 = vmatmul.mubr.bf16.vlgmr.msra.gmra.mxu1 %v260_v25 }
  0x6c   : > { %1041 = vmatprep.mubr.msk.bf16.mxu1 %vm1302_vm0, %v1301_v1 }
 0x129   : > { %v472_v35 = vpop.f32.mrf.mxu0 }
 0x12a   : > { %v473_v43 = vadd.f32 %v472_v35, %v298_v38 }
 0x12b   : > { %v474_v36 = vpop.f32.mrf.mxu0  ;;  %v515_v50 = vpop.f32.mrf.mxu1 }
 0x12c   : > { %v475_v37 = vadd.f32 %v474_v36, %v302_v33  ;;  %v990_v45 = vpack.c.bf16 %v473_v43, %v473_v43  ;;  %v516_v51 = vadd.f32 %v515_v50, %v306_v49 }
 0x12d   : > { %v476_v39 = vpop.f32.mrf.mxu0  ;;  %v1031_v52 = vpop.f32.mrf.mxu1 }
 0x12e   : > { %v992_v40 = vpack.c.bf16 %v475_v37, %v475_v37  ;;  %v477_v46 = vadd.f32 %v476_v39, %v298_v38  ;;  %v994_v53 = vpack.c.bf16 %v516_v51, %v516_v51 }
 0x12f   : > { %v478_v41 = vpop.f32.mrf.mxu0  ;;  %v518_v54 = vpop.f32.mrf.mxu1 }
 0x130   : > { %v479_v42 = vadd.f32 %v478_v41, %v302_v33  ;;  %1034 = vmatpush3.bf16.xpose.msra.mxu0 %v992_v40  ;;  %v991_v47 = vpack.c.bf16 %v477_v46, %v477_v46  ;;  %v700_v55 = vsel %vm698_vm1, %v994_v53, 0  ;;  %v519_v56 = vadd.f32 %v518_v54, %v306_v49 }
 0x131   : > { %1045 = vmatprep.subr.bf16.mxu0 %v1301_v1  ;;  %v1032_v57 = vpop.f32.mrf.mxu1 }
 0x132   : > { %v993_v44 = vpack.c.bf16 %v479_v42, %v479_v42  ;;  %v995_v58 = vpack.c.bf16 %v519_v56, %v519_v56 }
 0x134   : > { %1040 = vmatpush3.bf16.xpose.msra.mxu1 %v993_v44  ;;  %v746_v59 = vsel %vm698_vm1, %v995_v58, 0 }
 0x135   : > { %1051 = vmatprep.subr.bf16.mxu1 %v1301_v1 }
 0x137   : > { %1036 = vmatmul.mubr.bf16.vlgmr.msra.gmra.mxu0 %v990_v45 }
 0x138   : > { %1047 = vmatprep.mubr.msk.bf16.mxu0 %vm1302_vm0, %v1301_v1  ;;  %1046 = vmatpush3.bf16.msra.mxu0 %v700_v55 }
 0x13b   : > { %1042 = vmatmul.mubr.bf16.vlgmr.msra.gmra.mxu1 %v991_v47 }
 0x13c   : > { %1053 = vmatprep.mubr.msk.bf16.mxu1 %vm1302_vm0, %v1301_v1  ;;  %1052 = vmatpush3.bf16.msra.mxu1 %v746_v59 }
 0x1f7   : > { %v578_v60 = vpop.f32.mrf.mxu0 }
 0x1f8   : > { %v624_v61 = vmul.f32 0.17677669, %v578_v60 }
 0x1f9   : > { %v1037_v62 = vpop.f32.mrf.mxu0 }
 0x1fa   : > { %vm626_vm3 = vcmp.lt.f32.partialorder %v624_v61, inf }
 0x1fb   : > { %v581_v63 = vpop.f32.mrf.mxu0  ;;  %v618_v0 = vpop.f32.mrf.mxu1  ;;  %v628_v2 = vsel %vm626_vm3, %v624_v61, -inf }
 0x1fc   : > { %v625_v3 = vmul.f32 0.17677669, %v618_v0  ;;  %v631_v4 = vsel %vm630_vm2, %v628_v2, -inf }
 0x1fd   : > { %v1043_v5 = vpop.f32.mrf.mxu1  ;;  %632 = vmax.xlane.f32.xlu0 %v631_v4  ;;  %v1038_v6 = vpop.f32.mrf.mxu0 }
 0x1fe   : > { %vm627_vm4 = vcmp.lt.f32.partialorder %v625_v3, inf }
 0x1ff   : > { %v621_v7 = vpop.f32.mrf.mxu1  ;;  %v629_v8 = vsel %vm627_vm4, %v625_v3, -inf }
 0x200   : > { %v634_v9 = vsel %vm630_vm2, %v629_v8, -inf  ;;  %v803_v7 = vand.u32 127, %v295_v29 }
 0x201   : > { %v1044_v10 = vpop.f32.mrf.mxu1  ;;  %635 = vmax.xlane.f32.xlu0 %v634_v9 }
 0x202   : > { %vm804_vm15 = vcmp.lt.s32.totalorder %v803_v7, 32 }
 0x203   : > { %v983_v10 = vsel %vm804_vm15, 1.0, %v1301_v1 }
 0x286   : > { %v633_v11 = vpop.xlane.xlu0 %632 }
 0x287   : > { %vm637_vm5 = vcmp.lt.f32.partialorder %v624_v61, %v633_v11 }
 0x288   : > { %v639_v12 = vsel %vm637_vm5, %v624_v61, -inf }
 0x289   : > { %v641_v13 = vsel %vm630_vm2, %v639_v12, -inf }
 0x28a   : > { %642 = vmax.xlane.f32.xlu1 %v641_v13  ;;  %v636_v14 = vpop.xlane.xlu0 %635 }
 0x28b   : > { %vm638_vm6 = vcmp.lt.f32.partialorder %v625_v3, %v636_v14 }
 0x28c   : > { %v640_v15 = vsel %vm638_vm6, %v625_v3, -inf }
 0x28d   : > { %v644_v16 = vsel %vm630_vm2, %v640_v15, -inf }
 0x28e   : > { %645 = vmax.xlane.f32.xlu1 %v644_v16 }
 0x313   : > { %v643_v17 = vpop.xlane.xlu1 %642 }
 0x314   : > { %vm647_vm7 = vcmp.lt.f32.partialorder %v624_v61, %v643_v17 }
 0x315   : > { %v649_v18 = vsel %vm647_vm7, %v624_v61, -inf }
 0x316   : > { %v651_v19 = vsel %vm630_vm2, %v649_v18, -inf }
 0x317   : > { %652 = vmax.xlane.f32.xlu0 %v651_v19  ;;  %v646_v20 = vpop.xlane.xlu1 %645 }
 0x318   : > { %vm648_vm8 = vcmp.lt.f32.partialorder %v625_v3, %v646_v20 }
 0x319   : > { %v650_v21 = vsel %vm648_vm8, %v625_v3, -inf }
 0x31a   : > { %v654_v22 = vsel %vm630_vm2, %v650_v21, -inf }
 0x31b   : > { %655 = vmax.xlane.f32.xlu1 %v654_v22  ;;  %v984_v22 = vld [vmem:[%s1587_s3] ss:$0 sm:$0xff] }
 0x3a0   : > { %v653_v25 = vpop.xlane.xlu0 %652 }
 0x3a1   : > { %vm657_vm9 = vcmp.lt.f32.partialorder %v624_v61, %v653_v25 }
 0x3a2   : > { %v659_v26 = vsel %vm657_vm9, %v624_v61, -inf }
 0x3a3   : > { %v661_v27 = vsel %vm630_vm2, %v659_v26, -inf  ;;  %v985_v26 = vld [vmem:[%s1588_s4] ss:$0 sm:$0xff] }
 0x3a4   : > { %v656_v28 = vpop.xlane.xlu1 %655  ;;  %662 = vmax.xlane.f32.xlu0 %v661_v27 }
 0x3a5   : > { %vm658_vm10 = vcmp.lt.f32.partialorder %v625_v3, %v656_v28 }
 0x3a6   : > { %v660_v30 = vsel %vm658_vm10, %v625_v3, -inf }
 0x3a7   : > { %v664_v31 = vsel %vm630_vm2, %v660_v30, -inf }
 0x3a8   : > { %665 = vmax.xlane.f32.xlu1 %v664_v31 }
 0x42d   : > { %v663_v32 = vpop.xlane.xlu0 %662 }
 0x42e   : > { %vm667_vm11 = vcmp.ge.f32.partialorder %v624_v61, %v663_v32 }
 0x42f   : > { %v669_v33 = vsel %vm667_vm11, %v624_v61, -inf }
 0x430   : > { %v671_v34 = vsel %vm630_vm2, %v669_v33, -inf }
 0x431   : > { %v666_v35 = vpop.xlane.xlu1 %665  ;;  %672 = vmax.xlane.f32.xlu0 %v671_v34 }
 0x432   : > { %vm668_vm12 = vcmp.ge.f32.partialorder %v625_v3, %v666_v35 }
 0x433   : > { %v670_v36 = vsel %vm668_vm12, %v625_v3, -inf }
 0x434   : > { %v674_v37 = vsel %vm630_vm2, %v670_v36, -inf }
 0x435   : > { %675 = vmax.xlane.f32.xlu1 %v674_v37 }
 0x4ba   : > { %v673_v38 = vpop.xlane.xlu0 %672 }
 0x4bb   : > { %v677_v39 = vsub.f32 %v669_v33, %v673_v38 }
 0x4bd   : > { %v679_v40 = vmul.f32 1.442695, %v677_v39 }
 0x4be   : > { %v676_v41 = vpop.xlane.xlu1 %675 }
 0x4bf   : > { %1157 = vpow2.f32 %v679_v40  ;;  %v678_v42 = vsub.f32 %v670_v36, %v676_v41 }
 0x4c1   : > { %v681_v43 = vmul.f32 1.442695, %v678_v42 }
 0x4c3   : > { %1159 = vpow2.f32 %v681_v43 }
 0x4cc   : > { %v1158_v44 = vpop.eup %1157 }
 0x4cd   : > { %v683_v45 = vsel %vm630_vm2, %v1158_v44, 0.0 }
 0x4ce   : > { %684 = vadd.xlane.f32.xlu0 %v683_v45 }
 0x4d0   : > { %v1160_v46 = vpop.eup %1159 }
 0x4d1   : > { %v686_v47 = vsel %vm630_vm2, %v1160_v46, 0.0 }
 0x4d2   : > { %687 = vadd.xlane.f32.xlu1 %v686_v47 }
 0x557   : > { %v685_v48 = vpop.xlane.xlu0 %684 }
 0x558   : > { %1161 = vrcp.f32 %v685_v48 }
 0x55b   : > { %v688_v49 = vpop.xlane.xlu1 %687 }
 0x55c   : > { %1163 = vrcp.f32 %v688_v49 }
 0x565   : > { %v1162_v50 = vpop.eup %1161 }
 0x566   : > { %v691_v51 = vmul.f32 %v1162_v50, %v1158_v44 }
 0x568   : > { %v693_v52 = vpack.c.bf16 %v691_v51, %v691_v51 }
 0x569   : > { %v1164_v53 = vpop.eup %1163 }
 0x56a   : > { %1048 = vmatmul.mubr.msk.bf16.vlgmr.msra.gmra.mxu0 %vm630_vm2, %v693_v52  ;;  %v692_v54 = vmul.f32 %v1164_v53, %v1160_v46 }
 0x56c   : > { %v694_v55 = vpack.c.bf16 %v692_v54, %v692_v54 }
 0x56e   : > { %1054 = vmatmul.mubr.msk.bf16.vlgmr.msra.gmra.mxu1 %vm630_vm2, %v694_v55 }
 0x62a   : > { %v736_v56 = vpop.f32.mrf.mxu0 }
 0x62b   : > { %vm788_vm13 = vcmp.ge.f32.partialorder %v736_v56, 0.0  ;;  %v790_v57 = vmul.f32 0.01, %v736_v56 }
 0x62c   : > { %v1049_v58 = vpop.f32.mrf.mxu0 }
 0x62d   : > { %v792_v59 = vsel %vm788_vm13, %v736_v56, %v790_v57 }
 0x62e   : > { %v739_v60 = vpop.f32.mrf.mxu0  ;;  %v782_v61 = vpop.f32.mrf.mxu1  ;;  %v794_v62 = vadd.f32 %v792_v59, %v1480_v23 }
 0x62f   : > { %vm789_vm14 = vcmp.ge.f32.partialorder %v782_v61, 0.0  ;;  %v791_v63 = vmul.f32 0.01, %v782_v61 }
 0x630   : > { %v1055_v0 = vpop.f32.mrf.mxu1  ;;  %796 = vadd.xlane.f32.xlu0 %v794_v62  ;;  %v1050_v2 = vpop.f32.mrf.mxu0 }
 0x631   : > { %v793_v3 = vsel %vm789_vm14, %v782_v61, %v791_v63 }
 0x632   : > { %v785_v4 = vpop.f32.mrf.mxu1  ;;  %v795_v5 = vadd.f32 %v793_v3, %v1483_v24 }
 0x634   : > { %798 = vadd.xlane.f32.xlu1 %v795_v5  ;;  %v1056_v6 = vpop.f32.mrf.mxu1 }
 0x6b9   : > { %v797_v8 = vpop.xlane.xlu0 %796 }
 0x6ba   : > { %v800_v9 = vmul.f32 0.03125, %v797_v8 }
 0x6bc   : > { %v807_v11 = vsub.f32 %v794_v62, %v800_v9 }
 0x6bd   : > { %v799_v23 = vpop.xlane.xlu1 %798 }
 0x6be   : > { %v801_v12 = vmul.f32 0.03125, %v799_v23  ;;  %v809_v13 = vmul.f32 %v983_v10, %v807_v11 }
 0x6c0   : > { %v808_v14 = vsub.f32 %v795_v5, %v801_v12  ;;  %v811_v15 = vmul.f32 %v809_v13, %v809_v13 }
 0x6c2   : > { %813 = vadd.xlane.f32.xlu0 %v811_v15  ;;  %v810_v16 = vmul.f32 %v983_v10, %v808_v14 }
 0x6c4   : > { %v812_v17 = vmul.f32 %v810_v16, %v810_v16 }
 0x6c6   : > { %815 = vadd.xlane.f32.xlu1 %v812_v17 }
 0x74b   : > { %v814_v24 = vpop.xlane.xlu0 %813 }
 0x74c   : > { %v817_v18 = vmul.f32 0.03125, %v814_v24 }
 0x74e   : > { %v819_v29 = vadd.f32 1e-05, %v817_v18 }
 0x74f   : > { %v816_v19 = vpop.xlane.xlu1 %815 }
 0x750   : > { %1165 = vrsqrt.f32 %v819_v29  ;;  %v818_v20 = vmul.f32 0.03125, %v816_v19 }
 0x752   : > { %v820_v21 = vadd.f32 1e-05, %v818_v20 }
 0x754   : > { %1167 = vrsqrt.f32 %v820_v21 }
 0x75d   : > { %v1166_v1 = vpop.eup %1165 }
 0x75e   : > { %v823_v25 = vmul.f32 %v1166_v1, %v809_v13 }
 0x760   : > { %v832_v27 = vmul.f32 %v984_v22, %v823_v25 }
 0x761   : > { %v1168_v28 = vpop.eup %1167 }
 0x762   : > { %v841_v30 = vadd.f32 %v985_v26, %v832_v27  ;;  %v824_v31 = vmul.f32 %v1168_v28, %v810_v16 }
 0x764   : > { %v833_v32 = vmul.f32 %v984_v22, %v824_v31  ;;  %843 = vst [vmem:[%s256_s8] sm:$0xff] %v841_v30 }
 0x766   : > { %v842_v33 = vadd.f32 %v985_v26, %v833_v32 }
 0x768   : > { %844 = vst [vmem:[%s256_s8 + $0x8] sm:$0xff] %v842_v33 }
 0x769   : > { %1236 = shalt.err (!%p1233_p10)
}
 0x76a   : > { %s1237_s7 = scalar_lea.hbm %s1539_s14, 256  ;;  %s1241_s15 = scalar_lea.hbm %s1589_s5, 512 }
 0x76b   : > { %p1238_p5 = scmp.ne.s32.totalorder %s1539_s14, %s1237_s7  ;;  %p1242_p4 = scmp.lt.s32.totalorder %s1539_s14, %s1589_s5 }
 0x76c   : > { %p1243_p0 = scmp.lt.s32.totalorder %s1241_s15, %s1237_s7 }
 0x76d   : > { %p1239_p11 = pnand %p1238_p5, %p1605_p13 }
 0x76e   : > { %p1244_p1 = por %p1243_p0, %p1242_p4 }
 0x76f   : > { %p1240_p6 = pneg %p1239_p11 }
 0x771   : > { %p1245_p12 = pnand %p1244_p1, %p1240_p6 }
 0x773   : > { %1248 = shalt.err (!%p1245_p12)
}
 0x774   : > { %s1304_s8 = smov 128   ;;  %s1305_s9 = smov 256  }
 0x775   : > { %s1306_s13 = smov 8  }
 0x776   : > { %1063 = dma.vmem_to_hbm [thread:$0]  (%p1605_p13), %s1541_s10, 256, %s1539_s14, %s846_s22, %s1304_s8, %s1305_s9, %s1306_s13  }
 0x777 PF: > { %s873_s26 = sand.u32 1, %s1279_s18   ;;  %p1606_p2 = scmp.ne.s32.totalorder %s1597_s6, 0 }
 0x778   : > { %p1607_p3 = scmp.ge.s32.totalorder %s1291_s21, 2  ;;  %s874_s25 = scalar_lea.sflag [#allocation4], %s873_s26 }
 0x77a   : > { %p1074_p7 = pnand %p1607_p3, %p1606_p2 }
 0x77c   : > { %p1075_p8 = pneg %p1074_p7 }
 0x77e   : > { %1274 = dma.done.wait (%p1075_p8), %s874_s25, 256  }
 0x77f   : > { %1276 = vsyncadd (%p1075_p8), %s874_s25, 4294967040  ;;  %p19_p9 = scmp.ge.s32.totalorder %s1362_s24, 4   ;;  %s1608_s18 = smov %s1283_s19 }
 0x780   : > { %s1609_s19 = smov %s1287_s20  ;;  %s1610_s20 = smov %s1374_s27 }
 0x781   : > { %s1611_s21 = smov %s1362_s24  ;;  %21 = sbr.rel (!%p19_p9) target bundleno = 6 (0x6), region = 89 }
 0x786   :  { %879 = vsyncpa [#allocation3], 1 }
 0x787   :  { %881 = vsyncpa [#allocation3 + $0x1], 1 }
 0x788   :  { %882 = vsyncpa [#allocation6], 1 }
 0x789   :  { %883 = vsyncpa [#allocation4], 1 }
 0x78a   :  { %885 = vsyncpa [#allocation4 + $0x1], 1 }

</bundles_post_ra>
